<compile_context>
chip_gen: v7x
topology: tpu7x:2x2x1
jax: 0.10.0
libtpu: 0.0.40
codegen_flags: <defaults>
</compile_context>

<pallas_src>
import functools

import numpy as np
import jax
import jax.numpy as jnp
from jax.experimental import pallas as pl
from jax.experimental.pallas import tpu as pltpu

EPS = 1e-5                    # torch.nn.GroupNorm default eps
MXU_DTYPE = jnp.bfloat16      # MXU operand dtype; weights are stored in this

# tap order (dy outer, dx inner) — must match flatten_conv3x3_weight below
_OFFSETS = tuple((dy, dx) for dy in (-1, 0, 1) for dx in (-1, 0, 1))


# ----------------------------------------------------------------------------
# VMEM limit helper (generation / shape aware)
# ----------------------------------------------------------------------------

def _vmem_limit_bytes(step_bytes):
    cap = 48 * 1024 * 1024            # safe default even on v7x (64 MiB VMEM)
    try:
        info = pltpu.get_tpu_info()
        phys = getattr(info, "vmem_capacity_bytes", None)
        if phys:
            cap = int(phys) * 3 // 4
    except Exception:
        pass
    want = max(3 * int(step_bytes), 32 * 1024 * 1024)
    return int(min(want, cap))


# ----------------------------------------------------------------------------
# Pallas kernels
# ----------------------------------------------------------------------------

def _conv1x1_kernel(x_ref, w_ref, o_ref):
    # x_ref: (N, Cin, P) f32, w_ref: (Cout, Cin) bf16, o_ref: (N, Cout, P) f32.
    # Whole batch in a single kernel invocation (tiny coarsest level).
    for n in range(x_ref.shape[0]):
        o_ref[n] = jnp.dot(w_ref[...], x_ref[n].astype(MXU_DTYPE),
                           preferred_element_type=jnp.float32
                           ).astype(o_ref.dtype)


def _fpn_block_kernel(lat_ref, up_ref, mask_ref, wlat_ref, w1_ref, g1_ref,
                      b1_ref, w2_ref, g2_ref, b2_ref, gmat_ref,
                      out_ref, merge_ref, slab_ref, *, W):
    """Fused FPNBlock: lateral 1x1 conv + merge add + BasicBlockGN.

    Per grid step (one batch element):
      lat_ref  : (1, Cin, P) f32   lateral feature, channels-first, P = H*W
      up_ref   : (1, C,  P) f32    coarser feature, already nearest-2x upsampled
      mask_ref : (9, P)   bf16     per-tap spatial validity (1/0), precomputed
      wlat_ref : (C, Cin) bf16     lateral 1x1 conv weight
      w1/w2    : (C, 9*C) bf16     conv 3x3 weights, tap-major flattened
      g*/b*    : (C, 1)   f32      GroupNorm gamma / beta
      gmat_ref : (C, C)   f32      same-group indicator / (cpg * P)
      out_ref  : (1, C, P) f32     fpn_feat  (BasicBlockGN output)
      merge_ref: (1, C, P) f32     merge_feat (pre_feat for the next level)
      slab_ref : (9*C, P) bf16     VMEM scratch: im2col slab for the MXU
    """
    C = out_ref.shape[1]
    P = out_ref.shape[2]

    # ---- lateral 1x1 conv (bf16 MXU) fused with the merge add (f32) ----
    merge = jnp.dot(wlat_ref[...], lat_ref[0].astype(MXU_DTYPE),
                    preferred_element_type=jnp.float32) + up_ref[0]
    merge_ref[0] = merge.astype(merge_ref.dtype)

    mask = mask_ref[...]                                     # (9, P) bf16

    def conv3x3(x_f32, w_ref):
        # Build the 9-tap slab straight into VMEM scratch in bf16: lane roll
        # (XLU) + multiplicative boundary mask; centre tap written unmasked.
        # TODO(synk): on v7x (MRB) consider nine accumulated (C,C)@(C,P)
        # matmuls instead of the slab if the vst slot is still the limiter.
        x = x_f32.astype(MXU_DTYPE)
        for t, (dy, dx) in enumerate(_OFFSETS):
            d = dy * W + dx
            if d == 0:
                slab_ref[pl.ds(t * C, C), :] = x
            else:
                shifted = pltpu.roll(x, shift=(-d) % P, axis=1)
                slab_ref[pl.ds(t * C, C), :] = shifted * mask[t:t + 1, :]
        # One MXU matmul, contraction depth 9*C, f32 accumulate.
        return jnp.dot(w_ref[...], slab_ref[...],
                       preferred_element_type=jnp.float32)

    def group_norm(y, gamma, beta):
        # Per-group stats: single (C, C) @ (C, 2) dot (sum and sum-of-squares).
        stats = jnp.concatenate(
            [jnp.sum(y, axis=1, keepdims=True),
             jnp.sum(y * y, axis=1, keepdims=True)], axis=1)   # (C, 2)
        gstats = jnp.dot(gmat_ref[...], stats,
                         preferred_element_type=jnp.float32)   # (C, 2)
        mean = gstats[:, 0:1]
        var = gstats[:, 1:2] - mean * mean
        inv = jax.lax.rsqrt(var + EPS)
        return (y - mean) * (inv * gamma) + beta

    # ---- BasicBlockGN(merge) ----
    out1 = jnp.maximum(group_norm(conv3x3(merge, w1_ref),
                                  g1_ref[...], b1_ref[...]), 0.0)
    out2 = group_norm(conv3x3(out1, w2_ref), g2_ref[...], b2_ref[...])
    out_ref[0] = jnp.maximum(out2 + merge, 0.0).astype(out_ref.dtype)


# ----------------------------------------------------------------------------
# Pallas wrappers
# ----------------------------------------------------------------------------

def conv1x1_whole_batch(x, w):
    """x: (N, Cin, P) f32 channels-first flattened, w: (Cout, Cin) bf16."""
    N, Cin, P = x.shape
    Cout = w.shape[0]
    return pl.pallas_call(
        _conv1x1_kernel,
        out_shape=jax.ShapeDtypeStruct((N, Cout, P), jnp.float32),
    )(x, w)


def fpn_block(up_pre, lateral, p, *, H, W, n_gn):
    """One FPNBlock.  up_pre: (N, C, H*W) (already 2x-upsampled), lateral:
    (N, Cin, H*W).  Returns (out_feat, merge_feat), each (N, C, H*W) f32."""
    N, C, P = up_pre.shape
    Cin = lateral.shape[1]
    assert P == H * W

    gmat = _group_norm_matrix(C, n_gn, P)
    mask = _boundary_masks(H, W, MXU_DTYPE)
    kern = functools.partial(_fpn_block_kernel, W=W)

    # Rough per-step VMEM estimate: double-buffered activation blocks + bf16
    # slab scratch + weights/masks + live f32 intermediates.
    bpe = 4
    act = C * P * bpe
    step_bytes = (2 * (Cin * P * bpe + 3 * act)
                  + 9 * C * P * 2
                  + 6 * act
                  + (C * Cin + 18 * C * C + 9 * P) * 2
                  + C * C * bpe)

    compiler_params = pltpu.CompilerParams(
        dimension_semantics=("parallel",),
        vmem_limit_bytes=_vmem_limit_bytes(step_bytes),
    )

    out, merge = pl.pallas_call(
        kern,
        out_shape=(jax.ShapeDtypeStruct((N, C, P), jnp.float32),
                   jax.ShapeDtypeStruct((N, C, P), jnp.float32)),
        grid=(N,),
        in_specs=[
            pl.BlockSpec((1, Cin, P), lambda i: (i, 0, 0)),   # lateral
            pl.BlockSpec((1, C, P), lambda i: (i, 0, 0)),     # upsampled pre
            pl.BlockSpec((9, P), lambda i: (0, 0)),           # boundary masks
            pl.BlockSpec((C, Cin), lambda i: (0, 0)),         # w_lat (bf16)
            pl.BlockSpec((C, 9 * C), lambda i: (0, 0)),       # w1 (bf16)
            pl.BlockSpec((C, 1), lambda i: (0, 0)),           # g1
            pl.BlockSpec((C, 1), lambda i: (0, 0)),           # b1
            pl.BlockSpec((C, 9 * C), lambda i: (0, 0)),       # w2 (bf16)
            pl.BlockSpec((C, 1), lambda i: (0, 0)),           # g2
            pl.BlockSpec((C, 1), lambda i: (0, 0)),           # b2
            pl.BlockSpec((C, C), lambda i: (0, 0)),           # gmat
        ],
        out_specs=(pl.BlockSpec((1, C, P), lambda i: (i, 0, 0)),
                   pl.BlockSpec((1, C, P), lambda i: (i, 0, 0))),
        scratch_shapes=[pltpu.VMEM((9 * C, P), MXU_DTYPE)],
        compiler_params=compiler_params,
    )(lateral, up_pre, mask, p["w_lat"], p["w1"], p["g1"], p["b1"],
      p["w2"], p["g2"], p["b2"], gmat)
    return out, merge


# ----------------------------------------------------------------------------
# Host-side constants & glue
# ----------------------------------------------------------------------------

def _boundary_masks(H, W, dtype):
    """(9, H*W) per-tap spatial validity mask (1.0 valid / 0.0 out of image),
    tap order matching _OFFSETS / flatten_conv3x3_weight."""
    yy, xx = np.divmod(np.arange(H * W), W)
    rows = []
    for dy, dx in _OFFSETS:
        rows.append((yy + dy >= 0) & (yy + dy < H) &
                    (xx + dx >= 0) & (xx + dx < W))
    return jnp.asarray(np.stack(rows).astype(np.float32), dtype=dtype)


def _group_norm_matrix(C, G, P):
    """(C, C) matrix M with M[i, j] = 1/(cpg*P) if i, j share a group else 0."""
    cpg = C // G
    ch = np.arange(C)
    same = (ch[:, None] // cpg) == (ch[None, :] // cpg)
    return jnp.asarray(same.astype(np.float32) / float(cpg * P))


def flatten_conv3x3_weight(w):
    """PyTorch conv weight (Cout, Cin, 3, 3) -> (Cout, 9*Cin), tap-major, with
    tap order (dy outer, dx inner) matching the in-kernel slab construction."""
    Cout, Cin = w.shape[0], w.shape[1]
    return jnp.transpose(w, (0, 2, 3, 1)).reshape(Cout, 9 * Cin)


def upsample2x_nearest(x, H, W):
    """Nearest 2x upsample on channels-first flattened maps.
    x: (N, C, H*W) -> (N, C, (2H)*(2W)).  Matches nn.Upsample(2, 'nearest')."""
    N, C, _ = x.shape
    x = x.reshape(N, C, H, 1, W, 1)
    x = jnp.broadcast_to(x, (N, C, H, 2, W, 2))
    return x.reshape(N, C, 4 * H * W)


# ----------------------------------------------------------------------------
# FPN forward
# ----------------------------------------------------------------------------

def fpn_forward(rgb_feats, params, *, out_nch, n_gn):
    """rgb_feats: list of NCHW feature maps, coarsest first (each finer level
    is exactly 2x the previous spatial size).  Returns list of NCHW fpn feats."""
    flat, shapes = [], []
    for f in rgb_feats:
        N, C, H, W = f.shape
        flat.append(f.reshape(N, C, H * W).astype(jnp.float32))
        shapes.append((H, W))

    # coarsest_conv: 1x1, bias=False — whole batch in a single grid step.
    pre = conv1x1_whole_batch(flat[0], params["w_coarsest"])   # (N, out, P0)

    fpn_feats = []
    for i in range(1, len(rgb_feats)):
        Hp, Wp = shapes[i - 1]
        H, W = shapes[i]
        assert H == 2 * Hp and W == 2 * Wp, "each level must be 2x the previous"
        # TODO(synk): fuse this upsample into the Pallas kernels (saves one
        # HBM round trip of the largest activation at every level).
        up = upsample2x_nearest(pre, Hp, Wp)                   # (N, out, H*W)
        out, pre = fpn_block(up, flat[i], params["layers"][i - 1],
                             H=H, W=W, n_gn=n_gn)
        fpn_feats.append(out.reshape(out.shape[0], out_nch, H, W))
    return fpn_feats


# ----------------------------------------------------------------------------
# Deterministic parameter construction
# ----------------------------------------------------------------------------

def init_params(key, in_nchs, out_nch):
    n_layers = len(in_nchs) - 1
    keys = iter(jax.random.split(key, 1 + 3 * n_layers))

    def conv_w(cout, cin, k):
        fan_in = cin * k * k
        return (jax.random.normal(next(keys), (cout, cin, k, k), jnp.float32)
                * (1.0 / float(fan_in) ** 0.5))

    params = {
        "w_coarsest": conv_w(out_nch, in_nchs[0], 1)
                        .reshape(out_nch, in_nchs[0]).astype(MXU_DTYPE),
        "layers": [],
    }
    for i in range(1, len(in_nchs)):
        cin = in_nchs[i]
        params["layers"].append(dict(
            w_lat=conv_w(out_nch, cin, 1).reshape(out_nch, cin).astype(MXU_DTYPE),
            w1=flatten_conv3x3_weight(conv_w(out_nch, out_nch, 3)).astype(MXU_DTYPE),
            g1=jnp.ones((out_nch, 1), jnp.float32),
            b1=jnp.zeros((out_nch, 1), jnp.float32),
            w2=flatten_conv3x3_weight(conv_w(out_nch, out_nch, 3)).astype(MXU_DTYPE),
            g2=jnp.ones((out_nch, 1), jnp.float32),
            b2=jnp.zeros((out_nch, 1), jnp.float32),
        ))
    return params


if __name__ == "__main__":
    key = jax.random.PRNGKey(0)
    N = 2
    in_nchs = (128, 64, 32, 16)        # module defaults
    out_nch = 64
    n_gn = 8
    spatial = ((4, 8), (8, 16), (16, 32), (32, 64))   # coarsest -> finest

    k_par, *k_feats = jax.random.split(key, 1 + len(in_nchs))
    rgb_feats = [jax.random.normal(k, (N, c, h, w), jnp.float32)
                 for k, c, (h, w) in zip(k_feats, in_nchs, spatial)]
    params = init_params(k_par, in_nchs, out_nch)

    fpn_feats = fpn_forward(rgb_feats, params, out_nch=out_nch, n_gn=n_gn)
    for f in fpn_feats:
        jax.block_until_ready(f)

    assert len(fpn_feats) == len(in_nchs) - 1
    for f, (h, w) in zip(fpn_feats, spatial[1:]):
        assert f.shape == (N, out_nch, h, w)
        assert bool(jnp.all(jnp.isfinite(f)))
    print("KERNEL_OK")
</pallas_src>

<mosaic_0001>
module attributes {stable_mosaic.version = 11 : i64} {
  func.func @_conv1x1_kernel(%arg0: memref<2x128x32xf32, #tpu.memory_space<vmem>>, %arg1: memref<64x128xbf16, #tpu.memory_space<vmem>>, %arg2: memref<2x64x32xf32, #tpu.memory_space<vmem>>) attributes {dimension_semantics = [], scalar_prefetch = 0 : i64, scratch_operands = 0 : i64, tpu.core_type = #tpu.core_type<tc>} {
    %c0 = arith.constant 0 : index
    %c0_0 = arith.constant 0 : index
    %0 = vector.load %arg1[%c0, %c0_0] : memref<64x128xbf16, #tpu.memory_space<vmem>>, vector<64x128xbf16>
    %c0_1 = arith.constant 0 : index
    %c0_2 = arith.constant 0 : index
    %c0_3 = arith.constant 0 : index
    %1 = vector.load %arg0[%c0_1, %c0_2, %c0_3] : memref<2x128x32xf32, #tpu.memory_space<vmem>>, vector<1x128x32xf32>
    %2 = vector.shape_cast %1 : vector<1x128x32xf32> to vector<128x32xf32>
    %3 = arith.truncf %2 : vector<128x32xf32> to vector<128x32xbf16>
    %cst = arith.constant dense<0.000000e+00> : vector<64x32xf32>
    %4 = tpu.matmul %0, %3, %cst {dimension_numbers = #tpu.dot_dimension_numbers<[1], [0], [0], [1], [0, 0, 1, 1], [], []>} : vector<64x128xbf16>, vector<128x32xbf16>, vector<64x32xf32> -> vector<64x32xf32>
    %c0_4 = arith.constant 0 : index
    %c0_5 = arith.constant 0 : index
    %c0_6 = arith.constant 0 : index
    %5 = vector.load %arg2[%c0_4, %c0_5, %c0_6] : memref<2x64x32xf32, #tpu.memory_space<vmem>>, vector<1x64x32xf32>
    %6 = vector.shape_cast %5 : vector<1x64x32xf32> to vector<64x32xf32>
    %7 = vector.shape_cast %4 : vector<64x32xf32> to vector<1x64x32xf32>
    tpu.vector_store %arg2[%c0_4, %c0_5, %c0_6], %7 {strides = array<i32>} : memref<2x64x32xf32, #tpu.memory_space<vmem>>, vector<1x64x32xf32>,
    %c0_7 = arith.constant 0 : index
    %c0_8 = arith.constant 0 : index
    %8 = vector.load %arg1[%c0_7, %c0_8] : memref<64x128xbf16, #tpu.memory_space<vmem>>, vector<64x128xbf16>
    %c1 = arith.constant 1 : index
    %c0_9 = arith.constant 0 : index
    %c0_10 = arith.constant 0 : index
    %9 = vector.load %arg0[%c1, %c0_9, %c0_10] : memref<2x128x32xf32, #tpu.memory_space<vmem>>, vector<1x128x32xf32>
    %10 = vector.shape_cast %9 : vector<1x128x32xf32> to vector<128x32xf32>
    %11 = arith.truncf %10 : vector<128x32xf32> to vector<128x32xbf16>
    %cst_11 = arith.constant dense<0.000000e+00> : vector<64x32xf32>
    %12 = tpu.matmul %8, %11, %cst_11 {dimension_numbers = #tpu.dot_dimension_numbers<[1], [0], [0], [1], [0, 0, 1, 1], [], []>} : vector<64x128xbf16>, vector<128x32xbf16>, vector<64x32xf32> -> vector<64x32xf32>
    %c1_12 = arith.constant 1 : index
    %c0_13 = arith.constant 0 : index
    %c0_14 = arith.constant 0 : index
    %13 = vector.load %arg2[%c1_12, %c0_13, %c0_14] : memref<2x64x32xf32, #tpu.memory_space<vmem>>, vector<1x64x32xf32>
    %14 = vector.shape_cast %13 : vector<1x64x32xf32> to vector<64x32xf32>
    %15 = vector.shape_cast %12 : vector<64x32xf32> to vector<1x64x32xf32>
    tpu.vector_store %arg2[%c1_12, %c0_13, %c0_14], %15 {strides = array<i32>} : memref<2x64x32xf32, #tpu.memory_space<vmem>>, vector<1x64x32xf32>,
    return
  }
}

</mosaic_0001>

<bundles_post_ra>
// kernel: tpu_custom_call.1
= control target key start
LH: loop header
LB: loop body
LE: loop exit
PB: predicated region body
PF: predicated region fallthrough
CT: control target
= control target key end

     0   :  { %vm133_vm0 = vcmask 261120   ;;  %s588_s0 = inlined_call_operand.vmem [shape: f32[2,128,32], index: 0, kind: input, shape index: {}]   ;;  %s589_s1 = inlined_call_operand.vmem [shape: bf16[64,128], index: 1, kind: input, shape index: {}]   ;;  %s590_s2 = inlined_call_operand.vmem [shape: f32[2,64,32], index: 2, kind: output, shape index: {}]  }
   0x1   :  { %v20_v0 = vld [vmem:[%s588_s0] sm:$0xff]  ;;  %v21_v1 = vld [vmem:[%s588_s0 + $0x8] sm:$0xff]  ;;  %v22_v5 = vld [vmem:[%s588_s0 + $0x10] sm:$0xff] }
   0x2   :  { %v281_v2 = vld [vmem:[%s588_s0 + $0x80] sm:$0xff]  ;;  %v36_v3 = vpack.c.bf16 %v21_v1, %v20_v0  ;;  %v282_v4 = vld [vmem:[%s588_s0 + $0x88] sm:$0xff]  ;;  %v23_v6 = vld [vmem:[%s588_s0 + $0x18] sm:$0xff] }
   0x3   :  { %v167_v7 = vpack.c.bf16 %v282_v4, %v281_v2  ;;  %v37_v8 = vpack.c.bf16 %v23_v6, %v22_v5  ;;  %v283_v9 = vld [vmem:[%s588_s0 + $0x90] sm:$0xff]  ;;  %v284_v10 = vld [vmem:[%s588_s0 + $0x98] sm:$0xff]  ;;  %v24_v11 = vld [vmem:[%s588_s0 + $0x20] sm:$0xff] }
   0x4   :  { %333 = vmatprep.subr.bf16.mxu0 %v36_v3  ;;  %v168_v12 = vpack.c.bf16 %v284_v10, %v283_v9  ;;  %v25_v13 = vld [vmem:[%s588_s0 + $0x28] sm:$0xff]  ;;  %v285_v14 = vld [vmem:[%s588_s0 + $0xa0] sm:$0xff]  ;;  %v26_v18 = vld [vmem:[%s588_s0 + $0x30] sm:$0xff] }
   0x5   :  { %v286_v15 = vld [vmem:[%s588_s0 + $0xa8] sm:$0xff]  ;;  %357 = vmatprep.subr.bf16.mxu1 %v167_v7  ;;  %334 = vmatpush3.bf16.msra.mxu0 %v36_v3  ;;  %v38_v16 = vpack.c.bf16 %v25_v13, %v24_v11  ;;  %v27_v19 = vld [vmem:[%s588_s0 + $0x38] sm:$0xff]  ;;  %v287_v20 = vld [vmem:[%s588_s0 + $0xb0] sm:$0xff] }
   0x6   :  { %358 = vmatpush3.bf16.msra.mxu1 %v167_v7  ;;  %335 = vmatprep.subr.bf16.mxu0 %v37_v8  ;;  %v169_v17 = vpack.c.bf16 %v286_v15, %v285_v14  ;;  %v288_v21 = vld [vmem:[%s588_s0 + $0xb8] sm:$0xff]  ;;  %v39_v22 = vpack.c.bf16 %v27_v19, %v26_v18  ;;  %v28_v23 = vld [vmem:[%s588_s0 + $0x40] sm:$0xff]  ;;  %v29_v24 = vld [vmem:[%s588_s0 + $0x48] sm:$0xff] }
   0x7   :  { %359 = vmatprep.subr.bf16.mxu1 %v168_v12  ;;  %v170_v25 = vpack.c.bf16 %v288_v21, %v287_v20  ;;  %v289_v26 = vld [vmem:[%s588_s0 + $0xc0] sm:$0xff]  ;;  %v290_v27 = vld [vmem:[%s588_s0 + $0xc8] sm:$0xff]  ;;  %v30_v29 = vld [vmem:[%s588_s0 + $0x50] sm:$0xff]  ;;  %v40_v31 = vpack.c.bf16 %v29_v24, %v28_v23 }
   0x8   :  { %v381_v28 = vld [vmem:[%s589_s1] sm:$0xff]   ;;  %v31_v32 = vld [vmem:[%s588_s0 + $0x58] sm:$0xff]  ;;  %v171_v33 = vpack.c.bf16 %v290_v27, %v289_v26  ;;  %v291_v34 = vld [vmem:[%s588_s0 + $0xd0] sm:$0xff] }
   0x9   :  { %336 = vmatpush3.bf16.msra.mxu0 %v37_v8  ;;  %v382_v30 = vld [vmem:[%s589_s1] sm:$0xff]   ;;  %349 = vmatprep.mubr.bf16.mxu0 %v381_v28  ;;  %v292_v35 = vld [vmem:[%s588_s0 + $0xd8] sm:$0xff]  ;;  %v41_v36 = vpack.c.bf16 %v31_v32, %v30_v29  ;;  %v33_v39 = vld [vmem:[%s588_s0 + $0x68] sm:$0xff] }
   0xa   :  { %360 = vmatpush3.bf16.msra.mxu1 %v168_v12  ;;  %337 = vmatprep.subr.bf16.mxu0 %v38_v16  ;;  %v172_v37 = vpack.c.bf16 %v292_v35, %v291_v34  ;;  %v32_v38 = vld [vmem:[%s588_s0 + $0x60] sm:$0xff]  ;;  %v294_v41 = vld [vmem:[%s588_s0 + $0xe8] sm:$0xff]  ;;  %v34_v44 = vld [vmem:[%s588_s0 + $0x70] sm:$0xff] }
   0xb   :  { %361 = vmatprep.subr.bf16.mxu1 %v169_v17  ;;  %373 = vmatprep.mubr.bf16.mxu1 %v382_v30  ;;  %v293_v40 = vld [vmem:[%s588_s0 + $0xe0] sm:$0xff]  ;;  %v42_v42 = vpack.c.bf16 %v33_v39, %v32_v38  ;;  %v35_v45 = vld [vmem:[%s588_s0 + $0x78] sm:$0xff]  ;;  %v295_v46 = vld [vmem:[%s588_s0 + $0xf0] sm:$0xff] }
   0xc   :  { %v173_v43 = vpack.c.bf16 %v294_v41, %v293_v40  ;;  %v296_v47 = vld [vmem:[%s588_s0 + $0xf8] sm:$0xff]  ;;  %v43_v48 = vpack.c.bf16 %v35_v45, %v34_v44  ;;  %v383_v50 = vld [vmem:[%s589_s1 + $0x8] sm:$0xff]   ;;  %v385_v52 = vld [vmem:[%s589_s1 + $0x10] sm:$0xff]  }
   0xd   :  { %338 = vmatpush3.bf16.msra.mxu0 %v38_v16  ;;  %v174_v49 = vpack.c.bf16 %v296_v47, %v295_v46  ;;  %v384_v51 = vld [vmem:[%s589_s1 + $0x8] sm:$0xff]   ;;  %v386_v53 = vld [vmem:[%s589_s1 + $0x10] sm:$0xff]   ;;  %v387_v54 = vld [vmem:[%s589_s1 + $0x18] sm:$0xff]  }
   0xe   :  { %362 = vmatpush3.bf16.msra.mxu1 %v169_v17  ;;  %339 = vmatprep.subr.bf16.mxu0 %v39_v22  ;;  %v388_v55 = vld [vmem:[%s589_s1 + $0x18] sm:$0xff]  }
   0xf   :  { %363 = vmatprep.subr.bf16.mxu1 %v170_v25 }
  0x11   :  { %340 = vmatpush3.bf16.msra.mxu0 %v39_v22 }
  0x12   :  { %364 = vmatpush3.bf16.msra.mxu1 %v170_v25  ;;  %341 = vmatprep.subr.bf16.mxu0 %v40_v31 }
  0x13   :  { %365 = vmatprep.subr.bf16.mxu1 %v171_v33 }
  0x15   :  { %342 = vmatpush3.bf16.msra.mxu0 %v40_v31 }
  0x16   :  { %366 = vmatpush3.bf16.msra.mxu1 %v171_v33  ;;  %343 = vmatprep.subr.bf16.mxu0 %v41_v36 }
  0x17   :  { %367 = vmatprep.subr.bf16.mxu1 %v172_v37 }
  0x19   :  { %344 = vmatpush3.bf16.msra.mxu0 %v41_v36 }
  0x1a   :  { %368 = vmatpush3.bf16.msra.mxu1 %v172_v37  ;;  %345 = vmatprep.subr.bf16.mxu0 %v42_v42 }
  0x1b   :  { %369 = vmatprep.subr.bf16.mxu1 %v173_v43 }
  0x1d   :  { %346 = vmatpush3.bf16.msra.mxu0 %v42_v42 }
  0x1e   :  { %370 = vmatpush3.bf16.msra.mxu1 %v173_v43  ;;  %347 = vmatprep.subr.bf16.mxu0 %v43_v48 }
  0x1f   :  { %371 = vmatprep.subr.bf16.mxu1 %v174_v49 }
  0x21   :  { %348 = vmatpush3.bf16.msra.mxu0 %v43_v48 }
  0x22   :  { %372 = vmatpush3.bf16.msra.mxu1 %v174_v49 }
  0x24   :  { %350 = vmatmul.mubr.bf16.vlgmr.msra.gmra.mrb[0].mxu0 %v383_v50 }
  0x25   :  { %374 = vmatmul.mubr.bf16.vlgmr.msra.gmra.mrb[0].mxu1 %v384_v51  ;;  %353 = vmatprep.mubr.bf16.mxu0 %v385_v52 }
  0x26   :  { %377 = vmatprep.mubr.bf16.mxu1 %v386_v53 }
  0x2c   :  { %354 = vmatmul.mubr.bf16.gmra.mrb[4].mxu0 %v387_v54 }
  0x2d   :  { %378 = vmatmul.mubr.bf16.gmra.mrb[4].mxu1 %v388_v55 }
  0xf7   :  { %v351_v56 = vpop.f32.mrb[0].mxu0 }
  0xf8   :  { %136 = vst.msk [vmem:[%s590_s2 + $0x10] sm:$0xff] %vm133_vm0, %v351_v56  ;;  %v375_v57 = vpop.f32.mrb[0].mxu1  ;;  %v102_v58 = vpop.f32.mrb[1].mxu0 }
  0xf9   :  { %303 = vst.msk [vmem:[%s590_s2 + $0x50] sm:$0xff] %vm133_vm0, %v375_v57  ;;  %134 = vst.msk [vmem:[%s590_s2] sm:$0xff] %vm133_vm0, %v102_v58  ;;  %v233_v59 = vpop.f32.mrb[1].mxu1  ;;  %v352_v60 = vpop.f32.mrb[2].mxu0 }
  0xfa   :  { %301 = vst.msk [vmem:[%s590_s2 + $0x40] sm:$0xff] %vm133_vm0, %v233_v59  ;;  %137 = vst.msk [vmem:[%s590_s2 + $0x18] sm:$0xff] %vm133_vm0, %v352_v60  ;;  %v376_v61 = vpop.f32.mrb[2].mxu1  ;;  %v105_v62 = vpop.f32.mrb[3].mxu0 }
  0xfb   :  { %304 = vst.msk [vmem:[%s590_s2 + $0x58] sm:$0xff] %vm133_vm0, %v376_v61  ;;  %135 = vst.msk [vmem:[%s590_s2 + $0x8] sm:$0xff] %vm133_vm0, %v105_v62  ;;  %v236_v63 = vpop.f32.mrb[3].mxu1 }
  0xfc   :  { %302 = vst.msk [vmem:[%s590_s2 + $0x48] sm:$0xff] %vm133_vm0, %v236_v63 }
  0xff   :  { %v355_v0 = vpop.f32.mrb[4].mxu0 }
 0x100   :  { %140 = vst.msk [vmem:[%s590_s2 + $0x30] sm:$0xff] %vm133_vm0, %v355_v0  ;;  %v379_v1 = vpop.f32.mrb[4].mxu1  ;;  %v118_v2 = vpop.f32.mrb[5].mxu0 }
 0x101   :  { %307 = vst.msk [vmem:[%s590_s2 + $0x70] sm:$0xff] %vm133_vm0, %v379_v1  ;;  %138 = vst.msk [vmem:[%s590_s2 + $0x20] sm:$0xff] %vm133_vm0, %v118_v2  ;;  %v249_v3 = vpop.f32.mrb[5].mxu1  ;;  %v356_v4 = vpop.f32.mrb[6].mxu0 }
 0x102   :  { %305 = vst.msk [vmem:[%s590_s2 + $0x60] sm:$0xff] %vm133_vm0, %v249_v3  ;;  %141 = vst.msk [vmem:[%s590_s2 + $0x38] sm:$0xff] %vm133_vm0, %v356_v4  ;;  %v380_v5 = vpop.f32.mrb[6].mxu1  ;;  %v121_v6 = vpop.f32.mrb[7].mxu0 }
 0x103   :  { %308 = vst.msk [vmem:[%s590_s2 + $0x78] sm:$0xff] %vm133_vm0, %v380_v5  ;;  %139 = vst.msk [vmem:[%s590_s2 + $0x28] sm:$0xff] %vm133_vm0, %v121_v6  ;;  %v252_v7 = vpop.f32.mrb[7].mxu1 }
 0x104   :  { %306 = vst.msk [vmem:[%s590_s2 + $0x68] sm:$0xff] %vm133_vm0, %v252_v7 }

</bundles_post_ra>
